<compile_context>
chip_gen: v7x
topology: tpu7x:2x2x1
jax: 0.10.0
libtpu: 0.0.40
codegen_flags: <defaults>
</compile_context>

<pallas_src>
import jax
import jax.numpy as jnp
import numpy as np
from jax.experimental import pallas as pl
from jax.experimental.pallas import tpu as pltpu


def _pointwise_conv_kernel(x_ref, w_ref, b_ref, o_ref):
    """o[co, hw] = W[co, :] @ x[:, hw] + b[co].

    x_ref: (1, C_in, t_hw)   w_ref: (t_co, C_in)   b_ref: (t_co, 1)
    o_ref: (1, t_co, t_hw)
    """
    acc = jnp.dot(w_ref[...], x_ref[0], preferred_element_type=jnp.float32)
    o_ref[0] = (acc + b_ref[...].astype(jnp.float32)).astype(o_ref.dtype)


def _round_down(x, m):
    return (x // m) * m


def _pick_tiles(n, c_in, c_out, hw, itemsize, vmem_block_budget=28 * 1024 * 1024):
    """Choose (t_co, t_hw) so double-buffered blocks fit a conservative VMEM budget.

    Bytes ~= 2*c_in*t_hw (x) + 2*t_co*t_hw (out) + 2*t_co*c_in (w) + 2*t_co (b), all *itemsize.
    """
    t_co = c_out if c_out <= 256 else 256  # full dim, or a 8/256-aligned tile

    if hw <= 128:
        t_hw = hw  # block == full array dim: always a legal block shape
    else:
        fixed = 2 * t_co * (c_in + 1) * itemsize
        per_lane = 2 * (c_in + t_co) * itemsize
        t_hw = (vmem_block_budget - fixed) // per_lane
        t_hw = min(t_hw, 4096, -(-hw // 128) * 128)
        t_hw = max(128, _round_down(t_hw, 128))
        # Keep >= 2 grid steps so both v7x TensorCores are used.
        n_other = n * (-(-c_out // t_co))
        if n_other == 1 and t_hw >= hw:
            t_hw = max(128, _round_down(-(-hw // 2), 128))
    return t_co, t_hw


@jax.jit
def pointwise_conv2d(x_nchw, weight, bias):
    """1x1 conv, stride 1, no padding, groups=1 (PyTorch Conv2d semantics).

    x_nchw: (N, C_in, H, W)
    weight: (C_out, C_in, 1, 1)
    bias:   (C_out,)
    returns (N, C_out, H, W)
    """
    n, c_in, h, w = x_nchw.shape
    c_out = weight.shape[0]
    hw = h * w

    # Free (contiguity-preserving) reshapes -- no transposes, no extra HBM traffic.
    x3 = x_nchw.reshape(n, c_in, hw)        # (N, C_in, HW)
    w_mat = weight.reshape(c_out, c_in)     # (C_out, C_in)
    b_col = bias.reshape(c_out, 1)          # (C_out, 1)

    itemsize = np.dtype(x_nchw.dtype).itemsize
    t_co, t_hw = _pick_tiles(n, c_in, c_out, hw, itemsize)

    grid = (n, pl.cdiv(c_out, t_co), pl.cdiv(hw, t_hw))

    cost = pl.CostEstimate(
        flops=2 * n * hw * c_in * c_out,
        transcendentals=0,
        bytes_accessed=itemsize * (n * c_in * hw + c_out * c_in + c_out + n * c_out * hw),
    )

    out3 = pl.pallas_call(
        _pointwise_conv_kernel,
        out_shape=jax.ShapeDtypeStruct((n, c_out, hw), x_nchw.dtype),
        grid_spec=pltpu.PrefetchScalarGridSpec(
            num_scalar_prefetch=0,
            grid=grid,
            in_specs=[
                # x tile: lane axis is the (large) spatial dim.
                pl.BlockSpec((1, c_in, t_hw), lambda b, co, j: (b, 0, j)),
                # Weight / bias blocks stay resident across the inner spatial axis.
                pl.BlockSpec((t_co, c_in), lambda b, co, j: (co, 0)),
                pl.BlockSpec((t_co, 1), lambda b, co, j: (co, 0)),
            ],
            out_specs=pl.BlockSpec((1, t_co, t_hw), lambda b, co, j: (b, co, j)),
        ),
        compiler_params=pltpu.CompilerParams(
            dimension_semantics=("parallel", "parallel", "parallel"),
            vmem_limit_bytes=64 * 1024 * 1024,
        ),
        cost_estimate=cost,
    )(x3, w_mat, b_col)

    # TODO(synk): for very large C_in (weight block exceeding the VMEM budget) add a
    # K grid axis with an f32 VMEM accumulator (init at k==0, write at k==last).
    return out3.reshape(n, c_out, h, w)


def init_params(key, in_channels, out_channels, dtype=jnp.float32):
    # Deterministic init mimicking Conv2d default (kaiming-uniform-ish bounds).
    kw, kb = jax.random.split(key)
    bound = 1.0 / (in_channels ** 0.5)  # 1x1 kernel -> fan_in = in_channels
    weight = jax.random.uniform(
        kw, (out_channels, in_channels, 1, 1), dtype, minval=-bound, maxval=bound
    )
    bias = jax.random.uniform(kb, (out_channels,), dtype, minval=-bound, maxval=bound)
    return weight, bias


def _reference(x, weight, bias):
    c_out, c_in = weight.shape[:2]
    return (jnp.einsum("nchw,oc->nohw", x, weight.reshape(c_out, c_in))
            + bias[None, :, None, None])


if __name__ == "__main__":
    key = jax.random.PRNGKey(0)
    k_x, k_p, k_x2, k_p2 = jax.random.split(key, 4)

    # Main demo shape (matches the module's typical small usage).
    N, C_IN, C_OUT, H, W = 2, 4, 8, 16, 16
    x = jax.random.normal(k_x, (N, C_IN, H, W), dtype=jnp.float32)
    weight, bias = init_params(k_p, C_IN, C_OUT)

    out = jax.block_until_ready(pointwise_conv2d(x, weight, bias))
    assert out.shape == (N, C_OUT, H, W)
    assert jnp.allclose(out, _reference(x, weight, bias), atol=1e-5, rtol=1e-5)

    # Odd, non-128-aligned shape (exercises full-dim blocks, no % assert anymore).
    N2, C_IN2, C_OUT2, H2, W2 = 1, 3, 5, 9, 9
    x2 = jax.random.normal(k_x2, (N2, C_IN2, H2, W2), dtype=jnp.float32)
    w2, b2 = init_params(k_p2, C_IN2, C_OUT2)
    out2 = jax.block_until_ready(pointwise_conv2d(x2, w2, b2))
    assert out2.shape == (N2, C_OUT2, H2, W2)
    assert jnp.allclose(out2, _reference(x2, w2, b2), atol=1e-5, rtol=1e-5)

    print("KERNEL_OK")
</pallas_src>

<mosaic_0001>
module attributes {stable_mosaic.version = 11 : i64} {
  func.func @_pointwise_conv_kernel(%arg0: i32, %arg1: i32, %arg2: i32, %arg3: memref<1x4x256xf32, #tpu.memory_space<vmem>>, %arg4: memref<8x4xf32, #tpu.memory_space<vmem>>, %arg5: memref<8x1xf32, #tpu.memory_space<vmem>>, %arg6: memref<1x8x256xf32, #tpu.memory_space<vmem>>) attributes {dimension_semantics = [#tpu.dimension_semantics<parallel>, #tpu.dimension_semantics<parallel>, #tpu.dimension_semantics<parallel>], iteration_bounds = array<i64: 2, 1, 1>, scalar_prefetch = 0 : i64, scratch_operands = 0 : i64, tpu.core_type = #tpu.core_type<tc>, window_params = [{transform_indices = @transform_0, window_bounds = array<i64: 1, 4, 256>}, {transform_indices = @transform_1, window_bounds = array<i64: 8, 4>}, {transform_indices = @transform_2, window_bounds = array<i64: 8, 1>}, {transform_indices = @transform_3, window_bounds = array<i64: 1, 8, 256>}]} {
    %c0 = arith.constant 0 : index
    %c0_0 = arith.constant 0 : index
    %0 = vector.load %arg4[%c0, %c0_0] : memref<8x4xf32, #tpu.memory_space<vmem>>, vector<8x4xf32>
    %c0_1 = arith.constant 0 : index
    %c0_2 = arith.constant 0 : index
    %c0_3 = arith.constant 0 : index
    %1 = vector.load %arg3[%c0_1, %c0_2, %c0_3] : memref<1x4x256xf32, #tpu.memory_space<vmem>>, vector<1x4x256xf32>
    %2 = vector.shape_cast %1 : vector<1x4x256xf32> to vector<4x256xf32>
    %cst = arith.constant dense<0.000000e+00> : vector<8x256xf32>
    %3 = tpu.matmul %0, %2, %cst {dimension_numbers = #tpu.dot_dimension_numbers<[1], [0], [0], [1], [0, 0, 1, 1], [], []>} : vector<8x4xf32>, vector<4x256xf32>, vector<8x256xf32> -> vector<8x256xf32>
    %c0_4 = arith.constant 0 : index
    %c0_5 = arith.constant 0 : index
    %4 = vector.load %arg5[%c0_4, %c0_5] : memref<8x1xf32, #tpu.memory_space<vmem>>, vector<8x1xf32>
    %5 = vector.broadcast %4 : vector<8x1xf32> to vector<8x256xf32>
    %6 = arith.addf %3, %5 : vector<8x256xf32>
    %c0_6 = arith.constant 0 : index
    %c0_7 = arith.constant 0 : index
    %c0_8 = arith.constant 0 : index
    %7 = vector.load %arg6[%c0_6, %c0_7, %c0_8] : memref<1x8x256xf32, #tpu.memory_space<vmem>>, vector<1x8x256xf32>
    %8 = vector.shape_cast %7 : vector<1x8x256xf32> to vector<8x256xf32>
    %9 = vector.shape_cast %6 : vector<8x256xf32> to vector<1x8x256xf32>
    tpu.vector_store %arg6[%c0_6, %c0_7, %c0_8], %9 {strides = array<i32>} : memref<1x8x256xf32, #tpu.memory_space<vmem>>, vector<1x8x256xf32>,
    return
  }
  func.func @transform_0(%arg0: i32, %arg1: i32, %arg2: i32) -> (i32, i32, i32) {
    %c0_i32 = arith.constant 0 : i32
    %c0_i32_0 = arith.constant 0 : i32
    return %arg0, %c0_i32, %arg2 : i32, i32, i32
  }
  func.func @transform_1(%arg0: i32, %arg1: i32, %arg2: i32) -> (i32, i32) {
    %c0_i32 = arith.constant 0 : i32
    %c0_i32_0 = arith.constant 0 : i32
    return %arg1, %c0_i32 : i32, i32
  }
  func.func @transform_2(%arg0: i32, %arg1: i32, %arg2: i32) -> (i32, i32) {
    %c0_i32 = arith.constant 0 : i32
    %c0_i32_0 = arith.constant 0 : i32
    return %arg1, %c0_i32 : i32, i32
  }
  func.func @transform_3(%arg0: i32, %arg1: i32, %arg2: i32) -> (i32, i32, i32) {
    %c0_i32 = arith.constant 0 : i32
    return %arg0, %arg1, %arg2 : i32, i32, i32
  }
}

</mosaic_0001>

<bundles_post_ra>
// kernel: pointwise_conv2d.1
= control target key start
LH: loop header
LB: loop body
LE: loop exit
PB: predicated region body
PF: predicated region fallthrough
CT: control target
= control target key end

     0   :  { %8 = vsyncpa [#allocation3], 0  ;;  %s1033_s0 = inlined_call_operand.hbm [shape: f32[2,4,256], index: 0, kind: input, shape index: {}]   ;;  %s1034_s1 = inlined_call_operand.hbm [shape: f32[8,4], index: 1, kind: input, shape index: {}]   ;;  %s1035_s2 = inlined_call_operand.hbm [shape: f32[8,1], index: 2, kind: input, shape index: {}]   ;;  %s1036_s3 = inlined_call_operand.hbm [shape: f32[2,8,256], index: 3, kind: output, shape index: {}]  }
   0x1   :  { %10 = vsyncpa [#allocation3 + $0x1], 0 }
   0x2   :  { %11 = vsyncpa [#allocation6], 0 }
   0x3   :  { %12 = vsyncpa [#allocation4], 0 }
   0x4   :  { %14 = vsyncpa [#allocation4 + $0x1], 0  ;;  %s789_s12 = smov 0   ;;  %s791_s13 = smov 0  }
   0x5   :  { %s793_s14 = smov 0   ;;  %s795_s15 = smov 0  }
   0x6   :  { %s797_s16 = smov 0   ;;  %s799_s17 = smov 0  }
   0x7 LB: > { %s478_s18 = sadd.s32 4294967295, %s761_s17   ;;  %s479_s19 = sadd.s32 4294967294, %s761_s17   ;;  %s761_s17 = sphi %s799_s17, %s20_s17   ;;  %s757_s16 = sphi %s797_s16, %s1059_s16   ;;  %s753_s15 = sphi %s795_s15, %s1058_s15   ;;  %s749_s14 = sphi %s793_s14, %s1057_s14   ;;  %s745_s13 = sphi %s791_s13, %s1056_s13   ;;  %s741_s12 = sphi %s789_s12, %s1055_s12  }
   0x8   : > { %p61_p0 = scmp.ne.s32.totalorder %s745_s13, %s741_s12  ;;  %p823_p1 = scmp.eq.s32.totalorder %s478_s18, 0 }
   0x9   : > { %p827_p2 = scmp.eq.s32.totalorder %s478_s18, 1  ;;  %p147_p3 = scmp.eq.s32.totalorder %s479_s19, 1 }
   0xa   : > { %s1041_s20 = scalar_select %p823_p1, 1, 0 }
   0xb   : > { %s1042_s21 = scalar_select %p827_p2, 1, 0 }
   0xc   : > { %p833_p4 = por %p823_p1, %p61_p0  ;;  %p480_p5 = scmp.ge.s32.totalorder %s761_s17, 1 }
   0xd   : > { %p838_p6 = por %p147_p3, %p61_p0  ;;  %p154_p7 = scmp.lt.s32.totalorder %s761_s17, 3 }
   0xe   : > { %s1043_s22 = scalar_select %p833_p4, 1, 0 }
   0xf   : > { %s1044_s23 = scalar_select %p838_p6, 1, 0 }
  0x10   : > { %p843_p8 = pnand %p480_p5, %p154_p7  ;;  %s763_s25 = smov [#allocation5]  }
  0x11   : > { %s169_s26 = sshll.u32 %s763_s25, 4  ;;  %s764_s27 = smov [#allocation7]   ;;  %s170_s26 = int_to_ptr.vmem [resolvable:$true] %s169_s26 }
  0x12   : > { %s1045_s24 = scalar_select %p843_p8, 1, 0 }
  0x13   : > { %p514_p10 = pneg %p843_p8  ;;  %s182_s28 = sshll.u32 %s764_s27, 4  ;;  %s856_s28 = int_to_ptr.vmem [resolvable:$true] %s182_s28 }
  0x14   : > { %s589_s5 = scalar_lea.hbm %s1034_s1, 128 }
  0x15   : > { %p852_p11 = pnand %p514_p10, %p823_p1  ;;  %p590_p12 = scmp.ne.s32.totalorder %s1034_s1, %s589_s5 }
  0x16   : > { %p596_p5 = scmp.lt.u32.totalorder %s589_s5, %s1034_s1 }
  0x17   : > { %p591_p13 = pneg %p852_p11 }
  0x19   : > { %p592_p0 = pnand %p591_p13, %p590_p12 }
  0x1b   : > { %p593_p3 = pneg %p592_p0 }
  0x1d   : > { %p598_p7 = pnand %p596_p5, %p593_p3 }
  0x1f   : > { %601 = shalt.err (!%p598_p7)
}
  0x20   : > { %s602_s10 = scalar_lea.vmem %s170_s26, 128  ;;  %p610_p1 = scmp.lt.s32.totalorder %s170_s26, %s170_s26 }
  0x21   : > { %p603_p10 = scmp.ne.s32.totalorder %s170_s26, %s602_s10  ;;  %p611_p4 = scmp.lt.s32.totalorder %s602_s10, %s602_s10 }
  0x23   : > { %p605_p9 = pnand %p603_p10, %p591_p13  ;;  %p612_p8 = por %p611_p4, %p610_p1 }
  0x25   : > { %p606_p6 = pneg %p605_p9 }
  0x27   : > { %p613_p2 = pnand %p612_p8, %p606_p6 }
  0x29   : > { %616 = shalt.err (!%p613_p2)
}
  0x2a   : > { %517 = dma.hbm_to_vmem [thread:$0]  (!%p852_p11), %s1034_s1, 128, %s170_s26, [#allocation6]  }
  0x2b   : > { %s617_s27 = scalar_lea.hbm %s1035_s2, 128 }
  0x2c   : > { %p618_p9 = scmp.ne.s32.totalorder %s1035_s2, %s617_s27  ;;  %p624_p2 = scmp.lt.u32.totalorder %s617_s27, %s1035_s2 }
  0x2e   : > { %p620_p1 = pnand %p618_p9, %p591_p13 }
  0x30   : > { %p621_p4 = pneg %p620_p1 }
  0x32   : > { %p626_p6 = pnand %p624_p2, %p621_p4 }
  0x34   : > { %629 = shalt.err (!%p626_p6)
}
  0x35   : > { %s630_s26 = scalar_lea.vmem %s856_s28, 128  ;;  %p638_p3 = scmp.lt.s32.totalorder %s856_s28, %s856_s28 }
  0x36   : > { %p631_p8 = scmp.ne.s32.totalorder %s856_s28, %s630_s26  ;;  %p639_p5 = scmp.lt.s32.totalorder %s630_s26, %s630_s26 }
  0x38   : > { %p633_p12 = pnand %p631_p8, %p591_p13  ;;  %p640_p7 = por %p639_p5, %p638_p3 }
  0x3a   : > { %p634_p0 = pneg %p633_p12 }
  0x3c   : > { %p641_p10 = pnand %p640_p7, %p634_p0 }
  0x3e   : > { %644 = shalt.err (!%p641_p10)
}
  0x3f   : > { %520 = dma.hbm_to_vmem [thread:$0]  (!%p852_p11), %s1035_s2, 128, %s856_s28, [#allocation6]  }
  0x40   : > { %s39_s9 = sadd.s32 1, %s757_s16  ;;  %s48_s10 = sadd.s32 1, %s749_s14 }
  0x41   : > { %p41_p13 = scmp.ge.s32.totalorder %s39_s9, 2  ;;  %p55_p9 = scmp.ne.s32.totalorder %s749_s14, %s745_s13 }
  0x42   : > { %p56_p1 = scmp.eq.s32.totalorder %s761_s17, 0  ;;  %p531_p4 = scmp.lt.s32.totalorder %s761_s17, 2 }
  0x43   : > { %s1061_s9 = smov (%p41_p13, %s39_s9), 0  ;;  %p1047_p6 = scmp.ne.s32.totalorder %s1042_s21, 0 }
  0x44   : > { %p57_p2 = por %p56_p1, %p55_p9  ;;  %s43_s11 = ssub.s32 %s757_s16, %s1061_s9 }
  0x45   : > { %p915_p8 = por %p1047_p6, %p55_p9  ;;  %s193_s18 = sand.u32 1, %s749_s14  }
  0x46   : > { %p46_p12 = scmp.eq.s32.totalorder %s43_s11, 0  ;;  %s484_s28 = sshll.u32 %s193_s18, 3 }
  0x47   : > { %s500_s19 = sshll.u32 %s757_s16, 7  ;;  %s197_s21 = scalar_lea.vmem [#allocation2], %s484_s28 }
  0x48   : > { %s924_s25 = scalar_select %p46_p12, %s749_s14, %s48_s10  }
  0x49   : > { %s929_s4 = scalar_lea.hbm %s1033_s0, %s500_s19  ;;  %s207_s5 = sshll.u32 %s197_s21, 4  ;;  %s937_s5 = int_to_ptr.vmem [resolvable:$true] %s207_s5 }
  0x4a   : > { %p933_p11 = pnand %p531_p4, %p57_p2  ;;  %s194_s26 = scalar_lea.sflag [#allocation3], %s193_s18 }
  0x4b   : > { %s645_s7 = scalar_lea.hbm %s929_s4, 128  ;;  %s650_s11 = scalar_lea.hbm %s1033_s0, 256 }
  0x4c   : > { %p646_p0 = scmp.ne.s32.totalorder %s929_s4, %s645_s7  ;;  %p647_p3 = pneg %p933_p11 }
  0x4d   : > { %p651_p10 = scmp.lt.u32.totalorder %s929_s4, %s1033_s0  ;;  %p652_p13 = scmp.lt.u32.totalorder %s650_s11, %s645_s7 }
  0x4e   : > { %p648_p5 = pnand %p647_p3, %p646_p0  ;;  %p654_p1 = scmp.lt.u32.totalorder %s645_s7, %s929_s4 }
  0x4f   : > { %p653_p9 = por %p652_p13, %p651_p10 }
  0x50   : > { %p649_p7 = pneg %p648_p5 }
  0x51   : > { %p655_p4 = por %p654_p1, %p653_p9 }
  0x53   : > { %p656_p2 = pnand %p655_p4, %p649_p7 }
  0x55   : > { %659 = shalt.err (!%p656_p2)
}
  0x56   : > { %s660_s18 = scalar_lea.vmem %s937_s5, 128  ;;  %s765_s27 = smov [#allocation2]  }
  0x57   : > { %p661_p6 = scmp.ne.s32.totalorder %s937_s5, %s660_s18  ;;  %s665_s30 = sshll.u32 %s765_s27, 4  ;;  %s666_s30 = int_to_ptr.vmem [resolvable:$false] %s665_s30 }
  0x58   : > { %s667_s21 = scalar_lea.vmem %s666_s30, 256  ;;  %p668_p5 = scmp.lt.s32.totalorder %s937_s5, %s666_s30 }
  0x59   : > { %p663_p12 = pnand %p661_p6, %p647_p3  ;;  %p669_p10 = scmp.lt.s32.totalorder %s667_s21, %s660_s18 }
  0x5b   : > { %p664_p0 = pneg %p663_p12  ;;  %p670_p13 = por %p669_p10, %p668_p5 }
  0x5d   : > { %p671_p9 = pnand %p670_p13, %p664_p0 }
  0x5f   : > { %674 = shalt.err (!%p671_p9)
}
  0x60   : > { %524 = dma.hbm_to_vmem [thread:$0]  (!%p933_p11), %s929_s4, 128, %s937_s5, %s194_s26  }
  0x61   : > { %p1050_p7 = scmp.ne.s32.totalorder %s1045_s24, 0 }
  0x62   : > { %s967_s7 = sand.u32 (!%p1050_p7), 1, %s745_s13   ;;  %p1051_p3 = scmp.ne.s32.totalorder (!%p1050_p7), %s1043_s22, 0 }
  0x63   : > { %216 = sbr.rel (%p1050_p7) target bundleno = 344 (0x158), region = 32  ;;  %s488_s8 = sshll.u32 (!%p1050_p7), %s967_s7, 3 }
  0x64   : > { %s219_s10 = scalar_lea.sflag (!%p1050_p7), [#allocation3], %s967_s7  ;;  %s222_s11 = scalar_lea.vmem (!%p1050_p7), [#allocation2], %s488_s8 }
  0x6a   : > { %728 = dma.done.wait (%p1051_p3), %s219_s10, 128  }
  0x6b   : > { %730 = vsyncadd (%p1051_p3), %s219_s10, 4294967168  ;;  %p1052_p1 = scmp.ne.s32.totalorder %s1041_s20, 0 }
  0x6d   : > { %732 = dma.done.wait (%p1052_p1), [#allocation6], 256  }
  0x6e   : > { %734 = vsyncadd (%p1052_p1), [#allocation6], 4294967040  ;;  %v766_v0 = vmov 0.0   ;;  %v767_v1 = vmov 0   ;;  %v256_v2 = vld [vmem:[%s222_s11] sm:$0xff]  ;;  %vm269_vm0 = vcmask 1043456  }
  0x6f   : > { %338 = vmatprep.mubr.f32.mxu0 %v766_v0  ;;  %587 = vset.pattern.permute.xlu0 %v767_v1  ;;  %v257_v3 = vld [vmem:[#allocation7] sm:$0xff]  ;;  %v264_v4 = vcombine.high %v256_v2, %v256_v2  ;;  %v255_v5 = vld [vmem:[#allocation5] sm:$0xff]  ;;  %vm265_vm1 = vcmask 31744   ;;  %s491_s22 = sshll.u32 %s967_s7, 4  ;;  %s501_s20 = sshll.u32 %s753_s15, 8 }
  0x70   : > { %260 = vperm.xlu0 %587, %v257_v3   ;;  %s252_s24 = scalar_lea.vmem [#allocation8], %s491_s22  ;;  %s984_s26 = scalar_lea.hbm %s1036_s3, %s501_s20 }
  0x71   : > { %492 = vmatprep.subr.msk.mxu0 %vm269_vm0, %v264_v4  ;;  %s366_s4 = sshll.u32 %s252_s24, 4  ;;  %s348_s28 = scalar_lea.sflag [#allocation4], %s967_s7  ;;  %s986_s4 = int_to_ptr.vmem [resolvable:$true] %s366_s4 }
  0x72   : > { %493 = vmatpush1.msk.msra.mxu0 %vm269_vm0, %v256_v2  ;;  %s675_s15 = scalar_lea.vmem %s986_s4, 256  ;;  %s768_s19 = smov [#allocation8]  }
  0x73   : > { %494 = vmatmul.mubr.msk.f32.vlgmr.msra.gmra.mrb[0].mxu0 %vm265_vm1, %v255_v5  ;;  %p676_p11 = scmp.ne.s32.totalorder %s986_s4, %s675_s15  ;;  %s679_s18 = sshll.u32 %s768_s19, 4  ;;  %s680_s18 = int_to_ptr.vmem [resolvable:$false] %s679_s18 }
  0x74   : > { %s681_s27 = scalar_lea.vmem %s680_s18, 512  ;;  %p682_p6 = scmp.lt.s32.totalorder %s986_s4, %s680_s18 }
  0x75   : > { %p677_p4 = pnand %p676_p11, %p915_p8  ;;  %p683_p12 = scmp.lt.s32.totalorder %s681_s27, %s675_s15 }
  0x77   : > { %p678_p2 = pneg %p677_p4  ;;  %p684_p0 = por %p683_p12, %p682_p6 }
  0x79   : > { %p685_p5 = pnand %p684_p0, %p678_p2 }
  0xef   : > { %v261_v6 = vpop.permute.xlu0 %260 }
 0x146   : > { %v340_v7 = vpop.f32.mrb[0].mxu0 }
 0x147   : > { %v341_v8 = vadd.f32 %v340_v7, %v261_v6  ;;  %v342_v9 = vpop.f32.mrb[1].mxu0 }
 0x148   : > { %v343_v10 = vadd.f32 %v342_v9, %v261_v6 }
 0x149   : > { %345 = vst [vmem:[%s252_s24] sm:$0xff] %v341_v8 }
 0x14a   : > { %346 = vst [vmem:[%s252_s24 + $0x8] sm:$0xff] %v343_v10 }
 0x14b   : > { %688 = shalt.err (!%p685_p5)
}
 0x14c   : > { %s689_s30 = scalar_lea.hbm %s984_s26, 256  ;;  %s693_s8 = scalar_lea.hbm %s1036_s3, 512 }
 0x14d   : > { %p690_p10 = scmp.ne.s32.totalorder %s984_s26, %s689_s30  ;;  %p694_p7 = scmp.lt.u32.totalorder %s984_s26, %s1036_s3 }
 0x14e   : > { %p695_p3 = scmp.lt.u32.totalorder %s693_s8, %s689_s30  ;;  %p697_p11 = scmp.lt.u32.totalorder %s689_s30, %s984_s26 }
 0x14f   : > { %p691_p13 = pnand %p690_p10, %p915_p8 }
 0x150   : > { %p696_p1 = por %p695_p3, %p694_p7 }
 0x151   : > { %p692_p9 = pneg %p691_p13 }
 0x152   : > { %p698_p4 = por %p697_p11, %p696_p1 }
 0x154   : > { %p699_p2 = pnand %p698_p4, %p692_p9 }
 0x156   : > { %702 = shalt.err (!%p699_p2)
}
 0x157   : > { %512 = dma.vmem_to_hbm [thread:$0]  (%p915_p8), %s986_s4, 256, %s984_s26, %s348_s28  }
 0x158 PF: > { %s378_s22 = sand.u32 1, %s741_s12   ;;  %p1053_p6 = scmp.ne.s32.totalorder %s1044_s23, 0 }
 0x159   : > { %p1054_p12 = scmp.ge.s32.totalorder %s761_s17, 2  ;;  %s379_s20 = scalar_lea.sflag [#allocation4], %s378_s22 }
 0x15b   : > { %p526_p0 = pnand %p1054_p12, %p1053_p6 }
 0x15d   : > { %736 = dma.done.wait (!%p526_p0), %s379_s20, 256  }
 0x15e   : > { %738 = vsyncadd (!%p526_p0), %s379_s20, 4294967040  ;;  %s20_s17 = sadd.s32 1, %s761_s17   ;;  %s1055_s12 = smov %s745_s13 }
 0x15f   : > { %p17_p5 = scmp.ge.s32.totalorder %s20_s17, 4   ;;  %s1056_s13 = smov %s749_s14 }
 0x160   : > { %s1057_s14 = smov %s924_s25  ;;  %s1058_s15 = smov %s757_s16 }
 0x161   : > { %s1059_s16 = smov %s1061_s9  ;;  %19 = sbr.rel (!%p17_p5) target bundleno = 7 (0x7), region = 87 }
 0x168   :  { %384 = vsyncpa [#allocation3], 1 }
 0x169   :  { %386 = vsyncpa [#allocation3 + $0x1], 1 }
 0x16a   :  { %387 = vsyncpa [#allocation6], 1 }
 0x16b   :  { %388 = vsyncpa [#allocation4], 1 }
 0x16c   :  { %390 = vsyncpa [#allocation4 + $0x1], 1 }

</bundles_post_ra>
